<compile_context>
chip_gen: v7x
topology: tpu7x:2x2x1
jax: 0.10.0
libtpu: 0.0.40
codegen_flags: <defaults>
</compile_context>

<pallas_src>
import functools

import jax
import jax.numpy as jnp
from jax.experimental import pallas as pl
from jax.experimental.pallas import tpu as pltpu


def _cdiv(a, b):
    return (a + b - 1) // b


# ---------------------------------------------------------------------------
# Fused path: pooling + MLP + sigmoid + scale in a single kernel.
# Blocks: x/out (1, C, HW); weights passed pre-transposed so the whole MLP
# runs in the channel-in-sublane orientation produced by the keepdims reduce
# (no reshapes / relayouts inside the kernel).
# ---------------------------------------------------------------------------
def _fused_kernel(x_ref, w1t_ref, b1_ref, w2t_ref, b2_ref, o_ref, *, hw):
    x = x_ref[0]                                   # (C, HW), input dtype
    xf = x.astype(jnp.float32)                     # accumulate in f32
    mean = jnp.sum(xf, axis=-1, keepdims=True) * jnp.float32(1.0 / hw)  # (C, 1)
    mx = jnp.max(xf, axis=-1, keepdims=True)                            # (C, 1)

    def mlp(v):                                    # v: (C, 1) f32
        h = jnp.dot(w1t_ref[...], v, preferred_element_type=jnp.float32) + b1_ref[...]
        h = jnp.maximum(h, 0.0)                    # (Cr, 1)
        return jnp.dot(w2t_ref[...], h, preferred_element_type=jnp.float32) + b2_ref[...]

    a = jax.nn.sigmoid(mlp(mean) + mlp(mx))        # (C, 1) f32
    # Scale in the input dtype (no extra widening of the big block).
    o_ref[0] = (x * a.astype(x.dtype)).astype(o_ref.dtype)


# ---------------------------------------------------------------------------
# Fallback pass 1: tiled channel pooling (sum + max over the spatial axis).
# The HW axis is an "arbitrary" reduction axis; (1, 1, C) accumulators stay
# resident across it.  Only the (possibly partial) last tile is masked.
# ---------------------------------------------------------------------------
def _pool_kernel(x_ref, sum_ref, max_ref, *, hw, t_hw):
    t = pl.program_id(1)
    nt = pl.num_programs(1)

    @pl.when(t == 0)
    def _():
        sum_ref[...] = jnp.zeros_like(sum_ref)
        max_ref[...] = jnp.full_like(max_ref, -jnp.inf)

    x = x_ref[...].astype(jnp.float32)             # (1, C, t_hw)

    def accum(xs, xm):
        sum_ref[...] = sum_ref[...] + jnp.sum(xs, axis=-1)[:, None, :]
        max_ref[...] = jnp.maximum(max_ref[...], jnp.max(xm, axis=-1)[:, None, :])

    if hw % t_hw == 0:
        accum(x, x)                                # no masking needed anywhere
    else:
        @pl.when(t < nt - 1)
        def _():
            accum(x, x)

        @pl.when(t == nt - 1)
        def _():
            # Last tile is partial: out-of-bounds lanes hold undefined data,
            # so mask them for both the sum (0) and the max (-inf).  The last
            # tile always holds >= 1 valid element since nt = cdiv(hw, t_hw).
            lane = jax.lax.broadcasted_iota(jnp.int32, x.shape, 2)
            valid = (t * t_hw + lane) < hw
            accum(jnp.where(valid, x, 0.0), jnp.where(valid, x, -jnp.inf))


# ---------------------------------------------------------------------------
# Fallback pass 2: tiled elementwise scale y = x * a (lane-dense tiles,
# out-of-bounds writes of the partial last tile are clipped by Pallas).
# ---------------------------------------------------------------------------
def _scale_kernel(x_ref, a_ref, o_ref):
    o_ref[...] = (x_ref[...] * a_ref[...]).astype(o_ref.dtype)


def _pick_tile_hw(hw, c, itemsize, override=None):
    if override is not None:
        t = max(128, (int(override) // 128) * 128)
    else:
        target = max(1, (4 << 20) // max(1, c * itemsize))   # ~4 MiB blocks
        t = max(128, (target // 128) * 128)
    if t >= hw:
        return hw                                            # single full-dim tile
    return t


def cbam_channel_attention(x, w1, b1, w2, b2, *,
                           max_fused_vmem_bytes=24 * 1024 * 1024,
                           two_pass_tile_hw=None):
    """x: (B, C, H, W); w1: (C, Cr), b1: (Cr,), w2: (Cr, C), b2: (C,)."""
    B, C, H, W = x.shape
    HW = H * W
    dt = x.dtype
    itemsize = jnp.dtype(dt).itemsize
    Cr = w1.shape[1]

    x_flat = x.reshape(B, C, HW)                    # free (contiguous) reshape

    w1f = w1.astype(jnp.float32)
    b1f = b1.astype(jnp.float32)
    w2f = w2.astype(jnp.float32)
    b2f = b2.astype(jnp.float32)

    # Conservative per-step VMEM estimate for the fused path:
    # double-buffered input + output blocks plus the f32 working copy.
    block_bytes = C * HW * itemsize
    fused_bytes = 4 * block_bytes + C * HW * 4

    if fused_bytes <= max_fused_vmem_bytes:
        # ---------------- fused single-pass kernel ----------------
        w1t = w1f.T                                  # (Cr, C)
        w2t = w2f.T                                  # (C, Cr)
        b1c = b1f.reshape(Cr, 1)
        b2c = b2f.reshape(C, 1)

        out_flat = pl.pallas_call(
            functools.partial(_fused_kernel, hw=HW),
            out_shape=jax.ShapeDtypeStruct((B, C, HW), dt),
            grid_spec=pltpu.PrefetchScalarGridSpec(
                num_scalar_prefetch=0,
                grid=(B,),
                in_specs=[
                    pl.BlockSpec((1, C, HW), lambda b: (b, 0, 0)),
                    pl.BlockSpec((Cr, C), lambda b: (0, 0)),
                    pl.BlockSpec((Cr, 1), lambda b: (0, 0)),
                    pl.BlockSpec((C, Cr), lambda b: (0, 0)),
                    pl.BlockSpec((C, 1), lambda b: (0, 0)),
                ],
                out_specs=pl.BlockSpec((1, C, HW), lambda b: (b, 0, 0)),
            ),
            compiler_params=pltpu.CompilerParams(
                dimension_semantics=("parallel",),
                vmem_limit_bytes=48 * 1024 * 1024,
            ),
        )(x_flat, w1t, b1c, w2t, b2c)
        return out_flat.reshape(B, C, H, W)

    # ---------------- two-pass fallback (very large C*HW) ----------------
    t_hw = _pick_tile_hw(HW, C, itemsize, two_pass_tile_hw)
    n_hw = _cdiv(HW, t_hw)

    sum_bc, max_bc = pl.pallas_call(
        functools.partial(_pool_kernel, hw=HW, t_hw=t_hw),
        out_shape=(
            jax.ShapeDtypeStruct((B, 1, C), jnp.float32),
            jax.ShapeDtypeStruct((B, 1, C), jnp.float32),
        ),
        grid_spec=pltpu.PrefetchScalarGridSpec(
            num_scalar_prefetch=0,
            grid=(B, n_hw),
            in_specs=[pl.BlockSpec((1, C, t_hw), lambda b, t: (b, 0, t))],
            out_specs=[
                pl.BlockSpec((1, 1, C), lambda b, t: (b, 0, 0)),
                pl.BlockSpec((1, 1, C), lambda b, t: (b, 0, 0)),
            ],
        ),
        compiler_params=pltpu.CompilerParams(
            dimension_semantics=("parallel", "arbitrary"),
            vmem_limit_bytes=32 * 1024 * 1024,
        ),
    )(x_flat)

    # Tiny shared MLP + sigmoid on the pooled stats (negligible, plain XLA).
    mean = sum_bc.reshape(B, C) / jnp.float32(HW)
    mx = max_bc.reshape(B, C)

    def mlp(v):
        return jnp.maximum(v @ w1f + b1f, 0.0) @ w2f + b2f

    a = jax.nn.sigmoid(mlp(mean) + mlp(mx)).astype(dt)
    a3 = a.reshape(B, C, 1)

    out_flat = pl.pallas_call(
        _scale_kernel,
        out_shape=jax.ShapeDtypeStruct((B, C, HW), dt),
        grid_spec=pltpu.PrefetchScalarGridSpec(
            num_scalar_prefetch=0,
            grid=(B, n_hw),
            in_specs=[
                pl.BlockSpec((1, C, t_hw), lambda b, t: (b, 0, t)),
                pl.BlockSpec((1, C, 1), lambda b, t: (b, 0, 0)),
            ],
            out_specs=pl.BlockSpec((1, C, t_hw), lambda b, t: (b, 0, t)),
        ),
        compiler_params=pltpu.CompilerParams(
            dimension_semantics=("parallel", "parallel"),
            vmem_limit_bytes=32 * 1024 * 1024,
        ),
    )(x_flat, a3)

    return out_flat.reshape(B, C, H, W)


# ---------------------------------------------------------------------------
# Pure-JAX reference
# ---------------------------------------------------------------------------
def reference(x, w1, b1, w2, b2):
    avg = jnp.mean(x.astype(jnp.float32), axis=(2, 3))
    mx = jnp.max(x.astype(jnp.float32), axis=(2, 3))

    def mlp(v):
        return jnp.maximum(v @ w1 + b1, 0.0) @ w2 + b2

    a = jax.nn.sigmoid(mlp(avg) + mlp(mx)).astype(x.dtype)
    return x * a[:, :, None, None]


if __name__ == "__main__":
    key = jax.random.PRNGKey(0)
    C, reduction = 32, 8
    Cr = C // reduction  # 4

    k1, k2, k3, k4, kx1, kx2 = jax.random.split(key, 6)
    w1 = jax.random.normal(k1, (C, Cr), dtype=jnp.float32) * 0.1
    b1 = jax.random.normal(k2, (Cr,), dtype=jnp.float32) * 0.1
    w2 = jax.random.normal(k3, (Cr, C), dtype=jnp.float32) * 0.1
    b2 = jax.random.normal(k4, (C,), dtype=jnp.float32) * 0.1

    # Case 1: fused path, HW a multiple of 128.
    x1 = jax.random.normal(kx1, (2, C, 16, 16), dtype=jnp.float32)
    y1 = jax.block_until_ready(cbam_channel_attention(x1, w1, b1, w2, b2))
    assert jnp.allclose(y1, reference(x1, w1, b1, w2, b2), atol=1e-4, rtol=1e-5)

    # Case 2: fused path, HW not a multiple of 128 (full-dim block, no padding).
    x2 = jax.random.normal(kx2, (2, C, 12, 12), dtype=jnp.float32)
    y2 = jax.block_until_ready(cbam_channel_attention(x2, w1, b1, w2, b2))
    assert jnp.allclose(y2, reference(x2, w1, b1, w2, b2), atol=1e-4, rtol=1e-5)

    # Case 3: force the two-pass fallback (evenly tiled HW).
    y3 = jax.block_until_ready(
        cbam_channel_attention(x1, w1, b1, w2, b2,
                               max_fused_vmem_bytes=0, two_pass_tile_hw=128))
    assert jnp.allclose(y3, reference(x1, w1, b1, w2, b2), atol=1e-4, rtol=1e-5)

    # Case 4: force the two-pass fallback with a masked partial last tile.
    y4 = jax.block_until_ready(
        cbam_channel_attention(x2, w1, b1, w2, b2,
                               max_fused_vmem_bytes=0, two_pass_tile_hw=128))
    assert jnp.allclose(y4, reference(x2, w1, b1, w2, b2), atol=1e-4, rtol=1e-5)

    print("KERNEL_OK")
</pallas_src>

<mosaic_0001>
module attributes {stable_mosaic.version = 11 : i64} {
  func.func @_fused_kernel(%arg0: i32, %arg1: memref<1x32x256xf32, #tpu.memory_space<vmem>>, %arg2: memref<4x32xf32, #tpu.memory_space<vmem>>, %arg3: memref<4x1xf32, #tpu.memory_space<vmem>>, %arg4: memref<32x4xf32, #tpu.memory_space<vmem>>, %arg5: memref<32x1xf32, #tpu.memory_space<vmem>>, %arg6: memref<1x32x256xf32, #tpu.memory_space<vmem>>) attributes {dimension_semantics = [#tpu.dimension_semantics<parallel>], iteration_bounds = array<i64: 2>, scalar_prefetch = 0 : i64, scratch_operands = 0 : i64, tpu.core_type = #tpu.core_type<tc>, window_params = [{transform_indices = @transform_0, window_bounds = array<i64: 1, 32, 256>}, {pipeline_mode = #tpu.pipeline_mode<synchronous>, transform_indices = @transform_1, window_bounds = array<i64: 4, 32>}, {pipeline_mode = #tpu.pipeline_mode<synchronous>, transform_indices = @transform_2, window_bounds = array<i64: 4, 1>}, {pipeline_mode = #tpu.pipeline_mode<synchronous>, transform_indices = @transform_3, window_bounds = array<i64: 32, 4>}, {pipeline_mode = #tpu.pipeline_mode<synchronous>, transform_indices = @transform_4, window_bounds = array<i64: 32, 1>}, {transform_indices = @transform_5, window_bounds = array<i64: 1, 32, 256>}]} {
    %c0 = arith.constant 0 : index
    %c0_0 = arith.constant 0 : index
    %c0_1 = arith.constant 0 : index
    %0 = vector.load %arg1[%c0, %c0_0, %c0_1] : memref<1x32x256xf32, #tpu.memory_space<vmem>>, vector<1x32x256xf32>
    %1 = vector.shape_cast %0 : vector<1x32x256xf32> to vector<32x256xf32>
    %cst = arith.constant dense<0.000000e+00> : vector<32xf32>
    %2 = vector.multi_reduction <add>, %1, %cst [1] : vector<32x256xf32> to vector<32xf32>
    %3 = vector.shape_cast %2 : vector<32xf32> to vector<32x1xf32>
    %cst_2 = arith.constant 3.906250e-03 : f32
    %4 = vector.broadcast %cst_2 : f32 to vector<32x1xf32>
    %5 = arith.mulf %3, %4 : vector<32x1xf32>
    %cst_3 = arith.constant dense<0xFF800000> : vector<32xf32>
    %6 = vector.multi_reduction <maximumf>, %1, %cst_3 [1] : vector<32x256xf32> to vector<32xf32>
    %7 = vector.shape_cast %6 : vector<32xf32> to vector<32x1xf32>
    %c0_4 = arith.constant 0 : index
    %c0_5 = arith.constant 0 : index
    %8 = vector.load %arg2[%c0_4, %c0_5] : memref<4x32xf32, #tpu.memory_space<vmem>>, vector<4x32xf32>
    %cst_6 = arith.constant dense<0.000000e+00> : vector<4x1xf32>
    %9 = tpu.matmul %8, %5, %cst_6 {dimension_numbers = #tpu.dot_dimension_numbers<[1], [0], [0], [1], [0, 0, 1, 1], [], []>} : vector<4x32xf32>, vector<32x1xf32>, vector<4x1xf32> -> vector<4x1xf32>
    %c0_7 = arith.constant 0 : index
    %c0_8 = arith.constant 0 : index
    %10 = vector.load %arg3[%c0_7, %c0_8] : memref<4x1xf32, #tpu.memory_space<vmem>>, vector<4x1xf32>
    %11 = arith.addf %9, %10 : vector<4x1xf32>
    %cst_9 = arith.constant 0.000000e+00 : f32
    %12 = vector.broadcast %cst_9 : f32 to vector<4x1xf32>
    %13 = arith.maximumf %11, %12 : vector<4x1xf32>
    %c0_10 = arith.constant 0 : index
    %c0_11 = arith.constant 0 : index
    %14 = vector.load %arg4[%c0_10, %c0_11] : memref<32x4xf32, #tpu.memory_space<vmem>>, vector<32x4xf32>
    %cst_12 = arith.constant dense<0.000000e+00> : vector<32x1xf32>
    %15 = tpu.matmul %14, %13, %cst_12 {dimension_numbers = #tpu.dot_dimension_numbers<[1], [0], [0], [1], [0, 0, 1, 1], [], []>} : vector<32x4xf32>, vector<4x1xf32>, vector<32x1xf32> -> vector<32x1xf32>
    %c0_13 = arith.constant 0 : index
    %c0_14 = arith.constant 0 : index
    %16 = vector.load %arg5[%c0_13, %c0_14] : memref<32x1xf32, #tpu.memory_space<vmem>>, vector<32x1xf32>
    %17 = arith.addf %15, %16 : vector<32x1xf32>
    %c0_15 = arith.constant 0 : index
    %c0_16 = arith.constant 0 : index
    %18 = vector.load %arg2[%c0_15, %c0_16] : memref<4x32xf32, #tpu.memory_space<vmem>>, vector<4x32xf32>
    %cst_17 = arith.constant dense<0.000000e+00> : vector<4x1xf32>
    %19 = tpu.matmul %18, %7, %cst_17 {dimension_numbers = #tpu.dot_dimension_numbers<[1], [0], [0], [1], [0, 0, 1, 1], [], []>} : vector<4x32xf32>, vector<32x1xf32>, vector<4x1xf32> -> vector<4x1xf32>
    %c0_18 = arith.constant 0 : index
    %c0_19 = arith.constant 0 : index
    %20 = vector.load %arg3[%c0_18, %c0_19] : memref<4x1xf32, #tpu.memory_space<vmem>>, vector<4x1xf32>
    %21 = arith.addf %19, %20 : vector<4x1xf32>
    %cst_20 = arith.constant 0.000000e+00 : f32
    %22 = vector.broadcast %cst_20 : f32 to vector<4x1xf32>
    %23 = arith.maximumf %21, %22 : vector<4x1xf32>
    %c0_21 = arith.constant 0 : index
    %c0_22 = arith.constant 0 : index
    %24 = vector.load %arg4[%c0_21, %c0_22] : memref<32x4xf32, #tpu.memory_space<vmem>>, vector<32x4xf32>
    %cst_23 = arith.constant dense<0.000000e+00> : vector<32x1xf32>
    %25 = tpu.matmul %24, %23, %cst_23 {dimension_numbers = #tpu.dot_dimension_numbers<[1], [0], [0], [1], [0, 0, 1, 1], [], []>} : vector<32x4xf32>, vector<4x1xf32>, vector<32x1xf32> -> vector<32x1xf32>
    %c0_24 = arith.constant 0 : index
    %c0_25 = arith.constant 0 : index
    %26 = vector.load %arg5[%c0_24, %c0_25] : memref<32x1xf32, #tpu.memory_space<vmem>>, vector<32x1xf32>
    %27 = arith.addf %25, %26 : vector<32x1xf32>
    %28 = arith.addf %17, %27 : vector<32x1xf32>
    %29 = arith.negf %28 : vector<32x1xf32>
    %30 = math.exp %29 : vector<32x1xf32>
    %cst_26 = arith.constant 1.000000e+00 : f32
    %31 = vector.broadcast %cst_26 : f32 to vector<32x1xf32>
    %32 = arith.addf %31, %30 : vector<32x1xf32>
    %33 = arith.divf %31, %32 : vector<32x1xf32>
    %34 = vector.broadcast %33 : vector<32x1xf32> to vector<32x256xf32>
    %35 = arith.mulf %1, %34 : vector<32x256xf32>
    %c0_27 = arith.constant 0 : index
    %c0_28 = arith.constant 0 : index
    %c0_29 = arith.constant 0 : index
    %36 = vector.load %arg6[%c0_27, %c0_28, %c0_29] : memref<1x32x256xf32, #tpu.memory_space<vmem>>, vector<1x32x256xf32>
    %37 = vector.shape_cast %36 : vector<1x32x256xf32> to vector<32x256xf32>
    %38 = vector.shape_cast %35 : vector<32x256xf32> to vector<1x32x256xf32>
    tpu.vector_store %arg6[%c0_27, %c0_28, %c0_29], %38 {strides = array<i32>} : memref<1x32x256xf32, #tpu.memory_space<vmem>>, vector<1x32x256xf32>,
    return
  }
  func.func @transform_0(%arg0: i32) -> (i32, i32, i32) {
    %c0_i32 = arith.constant 0 : i32
    %c0_i32_0 = arith.constant 0 : i32
    %c0_i32_1 = arith.constant 0 : i32
    return %arg0, %c0_i32, %c0_i32_0 : i32, i32, i32
  }
  func.func @transform_1(%arg0: i32) -> (i32, i32) {
    %c0_i32 = arith.constant 0 : i32
    %c0_i32_0 = arith.constant 0 : i32
    %c0_i32_1 = arith.constant 0 : i32
    return %c0_i32, %c0_i32_0 : i32, i32
  }
  func.func @transform_2(%arg0: i32) -> (i32, i32) {
    %c0_i32 = arith.constant 0 : i32
    %c0_i32_0 = arith.constant 0 : i32
    %c0_i32_1 = arith.constant 0 : i32
    return %c0_i32, %c0_i32_0 : i32, i32
  }
  func.func @transform_3(%arg0: i32) -> (i32, i32) {
    %c0_i32 = arith.constant 0 : i32
    %c0_i32_0 = arith.constant 0 : i32
    %c0_i32_1 = arith.constant 0 : i32
    return %c0_i32, %c0_i32_0 : i32, i32
  }
  func.func @transform_4(%arg0: i32) -> (i32, i32) {
    %c0_i32 = arith.constant 0 : i32
    %c0_i32_0 = arith.constant 0 : i32
    %c0_i32_1 = arith.constant 0 : i32
    return %c0_i32, %c0_i32_0 : i32, i32
  }
  func.func @transform_5(%arg0: i32) -> (i32, i32, i32) {
    %c0_i32 = arith.constant 0 : i32
    %c0_i32_0 = arith.constant 0 : i32
    %c0_i32_1 = arith.constant 0 : i32
    return %arg0, %c0_i32, %c0_i32_0 : i32, i32, i32
  }
}

</mosaic_0001>

<bundles_post_ra>
// kernel: tpu_custom_call.1
= control target key start
LH: loop header
LB: loop body
LE: loop exit
PB: predicated region body
PF: predicated region fallthrough
CT: control target
= control target key end

     0   :  { %10 = vsyncpa [#allocation3], 0  ;;  %s1356_s0 = inlined_call_operand.hbm [shape: f32[2,32,256], index: 0, kind: input, shape index: {}]   ;;  %s1357_s1 = inlined_call_operand.vmem [shape: f32[4,32], index: 1, kind: input, shape index: {}]   ;;  %s1358_s2 = inlined_call_operand.vmem [shape: f32[4,1], index: 2, kind: input, shape index: {}]   ;;  %s1359_s3 = inlined_call_operand.vmem [shape: f32[32,4], index: 3, kind: input, shape index: {}]   ;;  %s1360_s4 = inlined_call_operand.vmem [shape: f32[32,1], index: 4, kind: input, shape index: {}]   ;;  %s1361_s5 = inlined_call_operand.hbm [shape: f32[2,32,256], index: 5, kind: output, shape index: {}]  }
   0x1   :  { %12 = vsyncpa [#allocation3 + $0x1], 0 }
   0x2   :  { %13 = vsyncpa [#allocation4], 0 }
   0x3   :  { %15 = vsyncpa [#allocation4 + $0x1], 0  ;;  %s1102_s18 = smov 0   ;;  %s1104_s19 = smov 0  }
   0x4   :  { %s1106_s20 = smov 0   ;;  %s1108_s21 = smov 0  }
   0x5 LB: > { %s1123_s22 = sadd.s32 4294967295, %s1060_s21   ;;  %s776_s23 = sadd.s32 4294967294, %s1060_s21   ;;  %s1060_s21 = sphi %s1108_s21, %s1374_s21   ;;  %s1056_s20 = sphi %s1106_s20, %s1373_s20   ;;  %s1052_s19 = sphi %s1104_s19, %s1372_s19   ;;  %s1048_s18 = sphi %s1102_s18, %s1371_s18  }
   0x6   : > { %s1127_s24 = sadd.s32 1, %s1060_s21   ;;  %s28_s25 = sadd.s32 1, %s1056_s20 }
   0x7   : > { %s25_s26 = ssub.s32 %s1060_s21, %s1127_s24  ;;  %p35_p0 = scmp.ne.s32.totalorder %s1056_s20, %s1052_s19 }
   0x8   : > { %p26_p1 = scmp.eq.s32.totalorder %s25_s26, 0  ;;  %p36_p2 = scmp.eq.s32.totalorder %s1060_s21, 0 }
   0x9   : > { %p41_p3 = scmp.ne.s32.totalorder %s1052_s19, %s1048_s18  ;;  %p42_p4 = scmp.eq.s32.totalorder %s1123_s22, 0 }
   0xa   : > { %s1139_s27 = scalar_select %p26_p1, %s1056_s20, %s28_s25  }
   0xb   : > { %p1141_p5 = por %p36_p2, %p35_p0  ;;  %p1145_p6 = por %p42_p4, %p41_p3 }
   0xc   : > { %p149_p7 = scmp.eq.s32.totalorder %s1123_s22, 1  ;;  %p155_p8 = scmp.eq.s32.totalorder %s776_s23, 1 }
   0xd   : > { %p904_p10 = scmp.lt.s32.totalorder %s1060_s21, 2  ;;  %s187_s7 = sand.u32 1, %s1056_s20  }
   0xe   : > { %p1152_p11 = por %p149_p7, %p35_p0  ;;  %p1156_p12 = por %p155_p8, %p41_p3 }
   0xf   : > { %s806_s8 = sshll.u32 %s1060_s21, 10  ;;  %s779_s9 = sshll.u32 %s187_s7, 6 }
  0x10   : > { %s1365_s30 = scalar_select %p1152_p11, 1, 0 }
  0x11   : > { %s1366_s6 = scalar_select %p1156_p12, 1, 0 }
  0x12   : > { %s1165_s12 = scalar_lea.hbm %s1356_s0, %s806_s8  ;;  %s191_s13 = scalar_lea.vmem [#allocation2], %s779_s9 }
  0x13   : > { %s198_s14 = sshll.u32 %s191_s13, 4  ;;  %p1169_p13 = pnand %p904_p10, %p1141_p5  ;;  %s1173_s14 = int_to_ptr.vmem [resolvable:$true] %s198_s14 }
  0x14   : > { %s1175_s16 = scalar_lea.sflag [#allocation3], %s187_s7  ;;  %s964_s17 = scalar_lea.hbm %s1165_s12, 1024 }
  0x15   : > { %p965_p0 = scmp.ne.s32.totalorder %s1165_s12, %s964_s17  ;;  %p966_p1 = pneg %p1169_p13 }
  0x16   : > { %s969_s26 = scalar_lea.hbm %s1356_s0, 2048  ;;  %p970_p4 = scmp.lt.u32.totalorder %s1165_s12, %s1356_s0 }
  0x17   : > { %p967_p2 = pnand %p966_p1, %p965_p0  ;;  %p971_p5 = scmp.lt.u32.totalorder %s969_s26, %s964_s17 }
  0x18   : > { %p973_p8 = scmp.lt.u32.totalorder %s964_s17, %s1165_s12 }
  0x19   : > { %p968_p3 = pneg %p967_p2  ;;  %p972_p7 = por %p971_p5, %p970_p4 }
  0x1b   : > { %p974_p10 = por %p973_p8, %p972_p7 }
  0x1d   : > { %p975_p9 = pnand %p974_p10, %p968_p3 }
  0x1f   : > { %978 = shalt.err (!%p975_p9)
}
  0x20   : > { %s979_s7 = scalar_lea.vmem %s1173_s14, 1024  ;;  %s1062_s9 = smov [#allocation2]  }
  0x21   : > { %p980_p0 = scmp.ne.s32.totalorder %s1173_s14, %s979_s7  ;;  %s984_s10 = sshll.u32 %s1062_s9, 4  ;;  %s985_s10 = int_to_ptr.vmem [resolvable:$false] %s984_s10 }
  0x22   : > { %s986_s11 = scalar_lea.vmem %s985_s10, 2048  ;;  %p987_p11 = scmp.lt.s32.totalorder %s1173_s14, %s985_s10 }
  0x23   : > { %p982_p2 = pnand %p980_p0, %p966_p1  ;;  %p988_p4 = scmp.lt.s32.totalorder %s986_s11, %s979_s7 }
  0x25   : > { %p983_p12 = pneg %p982_p2  ;;  %p989_p5 = por %p988_p4, %p987_p11 }
  0x27   : > { %p990_p7 = pnand %p989_p5, %p983_p12 }
  0x29   : > { %993 = shalt.err (!%p990_p7)
}
  0x2a   : > { %s1063_s13 = smov 256   ;;  %s1064_s17 = smov 16  }
  0x2b   : > { %899 = dma.hbm_to_vmem [thread:$0]  (!%p1169_p13), %s1165_s12, 1024, %s1173_s14, %s1175_s16, %s1063_s13, %s1063_s13, %s1064_s17  }
  0x2c   : > { %p782_p9 = scmp.ge.s32.totalorder %s1060_s21, 1  ;;  %p206_p1 = scmp.lt.s32.totalorder %s1060_s21, 3 }
  0x2e   : > { %p207_p3 = pnand %p782_p9, %p206_p1 }
  0x2f   : > { %s1206_s23 = sand.u32 (!%p207_p3), 1, %s1052_s19  }
  0x30   : > { %210 = sbr.rel (%p207_p3) target bundleno = 1054 (0x41e), region = 40  ;;  %s783_s25 = sshll.u32 (!%p207_p3), %s1206_s23, 6 }
  0x31   : > { %s213_s26 = scalar_lea.sflag (!%p207_p3), [#allocation3], %s1206_s23  ;;  %s216_s28 = scalar_lea.vmem (!%p207_p3), [#allocation2], %s783_s25 }
  0x37   : > { %1039 = dma.done.wait (%p1145_p6), %s213_s26, 1024  }
  0x38   : > { %1041 = vsyncadd (%p1145_p6), %s213_s26, 4294966272  ;;  %v1216_v0 = vld [vmem:[%s216_s28 + $0x20] sm:$0xff]  ;;  %v1218_v1 = vld [vmem:[%s216_s28 + $0x28] sm:$0xff]  ;;  %v1065_v12 = vmov 0.0|0.0   ;;  %vm1066_vm0 = vmmov 0   ;;  %v1067_v13 = vmov 0.0  }
  0x39   : > { %v1220_v2 = vld [vmem:[%s216_s28] sm:$0xff]  ;;  %v257_v3 = vadd.f32 %v1218_v1, %v1216_v0  ;;  %v1224_v4 = vld [vmem:[%s216_s28 + $0x8] sm:$0xff]  ;;  %v1226_v5 = vld [vmem:[%s216_s28 + $0x30] sm:$0xff]  ;;  %866 = vmatprep.subr.bf16.mxu0 %v1065_v12  ;;  %836 = vmatprep.mubr.msk.f32.mxu0 %vm1066_vm0, %v1067_v13  ;;  %v273_v17 = vmax.f32 %v1216_v0, %v1218_v1  ;;  %vm281_vm1 = vcmask 261120   ;;  %vm364_vm2 = vcmask 31744   ;;  %s242_s7 = scalar_lea.vmem [#allocation5], %s783_s25 }
  0x3a   : > { %v1228_v6 = vld [vmem:[%s216_s28 + $0x38] sm:$0xff]  ;;  %v251_v7 = vadd.f32 %v1224_v4, %v1220_v2  ;;  %v1232_v8 = vld [vmem:[%s216_s28 + $0x10] sm:$0xff]  ;;  %v267_v15 = vmax.f32 %v1220_v2, %v1224_v4  ;;  %v279_v28 = vld [vmem:[%s1357_s1] sm:$0xf]  ;;  %vm377_vm3 = vcmask 1043456   ;;  %v1068_v50 = vmov 0  }
  0x3b   : > { %v1234_v9 = vld [vmem:[%s216_s28 + $0x18] sm:$0xff]  ;;  %258 = vadd.xlane.f32.xlu1 %v257_v3  ;;  %v260_v10 = vadd.f32 %v1228_v6, %v1226_v5  ;;  %v276_v16 = vmax.f32 %v1226_v5, %v1228_v6  ;;  %v356_v29 = vld [vmem:[%s1359_s3] sm:$0xff]  ;;  %v357_v38 = vld [vmem:[%s1359_s3 + $0x8] sm:$0xff]  ;;  %946 = vset.pattern.permute.xlu0 %v1068_v50  ;;  %s703_s9 = sshll.u32 %s242_s7, 4  ;;  %s807_s10 = sshll.u32 %s1123_s22, 10  ;;  %s1305_s9 = int_to_ptr.vmem [resolvable:$true] %s703_s9 }
  0x3c   : > { %252 = vadd.xlane.f32.xlu0 %v251_v7  ;;  %v254_v11 = vadd.f32 %v1234_v9, %v1232_v8  ;;  %v270_v14 = vmax.f32 %v1232_v8, %v1234_v9  ;;  %841 = vmatprep.mubr.msk.f32.mxu1 %vm364_vm2, %v356_v29  ;;  %v280_v30 = vld [vmem:[%s1358_s2] sm:$0xf]  ;;  %v358_v41 = vld [vmem:[%s1359_s3 + $0x10] sm:$0xff]  ;;  %v359_v43 = vld [vmem:[%s1359_s3 + $0x18] sm:$0xff]  ;;  %s1310_s13 = scalar_lea.hbm %s1361_s5, %s807_s10  ;;  %s690_s22 = scalar_lea.sflag [#allocation4], %s1206_s23 }
  0x3d   : > { %947 = vset.pattern.permute.xlu1 %v1068_v50  ;;  %v361_v51 = vld [vmem:[%s1360_s4 + $0x8] sm:$0xff]  ;;  %v360_v52 = vld [vmem:[%s1360_s4] sm:$0xff]  ;;  %v363_v53 = vld [vmem:[%s1360_s4 + $0x18] sm:$0xff]  ;;  %s994_s17 = scalar_lea.vmem %s1305_s9, 1024  ;;  %p1368_p11 = scmp.ne.s32.totalorder %s1365_s30, 0 }
  0x3e   : > { %v880_v54 = vadd.f32 %v361_v51, %v361_v51  ;;  %v362_v55 = vld [vmem:[%s1360_s4 + $0x10] sm:$0xff]  ;;  %v886_v57 = vadd.f32 %v363_v53, %v363_v53  ;;  %p995_p6 = scmp.ne.s32.totalorder %s1305_s9, %s994_s17  ;;  %s1069_s26 = smov [#allocation5]  }
  0x3f   : > { %261 = vadd.xlane.f32.xlu1 %v260_v10  ;;  %v888_v58 = vadd.f32 %v362_v55, %v362_v55  ;;  %s998_s28 = sshll.u32 %s1069_s26, 4  ;;  %s999_s28 = int_to_ptr.vmem [resolvable:$false] %s998_s28 }
  0x40   : > { %255 = vadd.xlane.f32.xlu0 %v254_v11  ;;  %p996_p12 = pnand %p995_p6, %p1368_p11  ;;  %s1000_s29 = scalar_lea.vmem %s999_s28, 2048 }
  0x41   : > { %p1001_p8 = scmp.lt.s32.totalorder %s1305_s9, %s999_s28  ;;  %p1002_p10 = scmp.lt.s32.totalorder %s1000_s29, %s994_s17 }
  0x42   : > { %p997_p13 = pneg %p996_p12 }
  0x43   : > { %271 = vmax.xlane.f32.xlu1 %v270_v14  ;;  %p1003_p0 = por %p1002_p10, %p1001_p8 }
  0x44   : > { %268 = vmax.xlane.f32.xlu0 %v267_v15 }
  0x45   : > { %p1004_p2 = pnand %p1003_p0, %p997_p13 }
  0x47   : > { %277 = vmax.xlane.f32.xlu1 %v276_v16 }
  0x48   : > { %274 = vmax.xlane.f32.xlu0 %v273_v17 }
  0xc8   : > { %v259_v18 = vpop.xlane.xlu1 %258 }
  0xc9   : > { %v253_v19 = vpop.xlane.xlu0 %252  ;;  %v265_v24 = vmul.f32 0.00390625, %v259_v18 }
  0xca   : > { %v263_v22 = vmul.f32 0.00390625, %v253_v19 }
  0xcc   : > { %v262_v20 = vpop.xlane.xlu1 %261 }
  0xcd   : > { %v256_v21 = vpop.xlane.xlu0 %255  ;;  %v266_v25 = vmul.f32 0.00390625, %v262_v20 }
  0xce   : > { %v264_v23 = vmul.f32 0.00390625, %v256_v21 }
  0xcf   : > { %v870_v27 = vpack.c.bf16 %v266_v25, %v265_v24 }
  0xd0   : > { %v867_v26 = vpack.c.bf16 %v264_v23, %v263_v22  ;;  %v272_v31 = vpop.xlane.xlu1 %271 }
  0xd1   : > { %v269_v32 = vpop.xlane.xlu0 %268 }
  0xd2   : > { %868 = vmatpush3.bf16.msra.mxu0 %v867_v26  ;;  %v873_v37 = vpack.c.bf16 %v272_v31, %v269_v32 }
  0xd3   : > { %869 = vmatprep.subr.bf16.mxu0 %v1065_v12 }
  0xd4   : > { %v278_v39 = vpop.xlane.xlu1 %277 }
  0xd5   : > { %v275_v40 = vpop.xlane.xlu0 %274 }
  0xd6   : > { %871 = vmatpush3.bf16.msra.mxu0 %v870_v27  ;;  %v876_v42 = vpack.c.bf16 %v278_v39, %v275_v40 }
  0xd9   : > { %837 = vmatmul.mubr.msk.f32.vlgmr.msra.gmra.mrb[0].mxu0 %vm281_vm1, %v279_v28 }
  0xda   : > { %860 = vmatprep.mubr.msk.f32.mxu0 %vm364_vm2, %v356_v29 }
 0x1ac   : > { %v351_v33 = vpop.f32.mrb[0].mxu0 }
 0x1ad   : > { %v352_v34 = vadd.f32 %v351_v33, %v280_v30  ;;  %v838_v35 = vpop.f32.mrb[1].mxu0 }
 0x1af   : > { %v355_v36 = vmax.f32 %v352_v34, 0.0 }
 0x1b1   : > { %839 = vmatprep.subr.msk.mxu1 %vm377_vm3, %v355_v36 }
 0x1b2   : > { %840 = vmatpush3.msk.msra.mxu1 %vm377_vm3, %v355_v36 }
 0x1b3   : > { %842 = vmatmul.mubr.msk.f32.vlgmr.msra.gmra.mrb[0].mxu1 %vm364_vm2, %v357_v38  ;;  %872 = vmatprep.subr.bf16.mxu1 %v1065_v12 }
 0x1b4   : > { %874 = vmatpush3.bf16.msra.mxu1 %v873_v37  ;;  %844 = vmatprep.mubr.msk.f32.mxu1 %vm364_vm2, %v358_v41 }
 0x1b5   : > { %875 = vmatprep.subr.bf16.mxu1 %v1065_v12 }
 0x1b7   : > { %845 = vmatmul.mubr.msk.f32.gmra.mrb[2].mxu1 %vm364_vm2, %v359_v43 }
 0x1b8   : > { %877 = vmatpush3.bf16.msra.mxu1 %v876_v42  ;;  %855 = vmatprep.mubr.msk.f32.mxu1 %vm1066_vm0, %v1067_v13 }
 0x1bb   : > { %856 = vmatmul.mubr.msk.f32.vlgmr.msra.gmra.mrb[4].mxu1 %vm281_vm1, %v279_v28 }
 0x1bc   : > { %863 = vmatprep.mubr.msk.f32.mxu1 %vm364_vm2, %v358_v41 }
 0x286   : > { %v843_v44 = vpop.f32.mrb[0].mxu1 }
 0x287   : > { %v447_v45 = vpop.f32.mrb[1].mxu1  ;;  %v881_v59 = vadd.f32 %v880_v54, %v843_v44 }
 0x288   : > { %v448_v56 = vadd.f32 %v447_v45, %v360_v52 }
 0x28a   : > { %v884_v62 = vadd.f32 %v448_v56, %v360_v52 }
 0x28e   : > { %v532_v46 = vpop.f32.mrb[4].mxu1 }
 0x28f   : > { %v533_v47 = vadd.f32 %v532_v46, %v280_v30  ;;  %v857_v48 = vpop.f32.mrb[5].mxu1 }
 0x291   : > { %v536_v49 = vmax.f32 %v533_v47, 0.0 }
 0x293   : > { %858 = vmatprep.subr.msk.mxu0 %vm377_vm3, %v536_v49  ;;  %878 = vmatprep.subr.msk.mxu1 %vm377_vm3, %v536_v49 }
 0x294   : > { %859 = vmatpush3.msk.msra.mxu0 %vm377_vm3, %v536_v49  ;;  %879 = vmatpush3.msk.msra.mxu1 %vm377_vm3, %v536_v49 }
 0x295   : > { %861 = vmatmul.mubr.msk.f32.vlgmr.msra.gmra.mrb[2].mxu0 %vm364_vm2, %v357_v38  ;;  %864 = vmatmul.mubr.msk.f32.vlgmr.msra.gmra.mrb[2].mxu1 %vm364_vm2, %v359_v43 }
 0x368   : > { %v862_v60 = vpop.f32.mrb[2].mxu0  ;;  %v865_v61 = vpop.f32.mrb[2].mxu1 }
 0x369   : > { %v882_v63 = vadd.f32 %v881_v59, %v862_v60  ;;  %v887_v3 = vadd.f32 %v886_v57, %v865_v61  ;;  %v606_v7 = vpop.f32.mrb[3].mxu0  ;;  %v616_v10 = vpop.f32.mrb[3].mxu1 }
 0x36a   : > { %v885_v11 = vadd.f32 %v884_v62, %v606_v7  ;;  %v889_v12 = vadd.f32 %v888_v58, %v616_v10 }
 0x36b   : > { %v798_v13 = vmul.f32 -1.442695, %v882_v63  ;;  %v800_v16 = vmul.f32 -1.442695, %v887_v3 }
 0x36c   : > { %v797_v14 = vmul.f32 -1.442695, %v885_v11  ;;  %v799_v15 = vmul.f32 -1.442695, %v889_v12 }
 0x36d   : > { %948 = vpow2.f32 %v798_v13 }
 0x36e   : > { %950 = vpow2.f32 %v797_v14 }
 0x36f   : > { %952 = vpow2.f32 %v799_v15 }
 0x370   : > { %954 = vpow2.f32 %v800_v16 }
 0x377   : > { %v949_v17 = vpop.eup %948 }
 0x378   : > { %v642_v18 = vadd.f32 1.0, %v949_v17  ;;  %v951_v19 = vpop.eup %950 }
 0x379   : > { %v953_v20 = vpop.eup %952  ;;  %v641_v21 = vadd.f32 1.0, %v951_v19 }
 0x37a   : > { %956 = vrcp.f32 %v642_v18  ;;  %v955_v22 = vpop.eup %954  ;;  %v643_v23 = vadd.f32 1.0, %v953_v20 }
 0x37b   : > { %958 = vrcp.f32 %v641_v21  ;;  %v644_v24 = vadd.f32 1.0, %v955_v22 }
 0x37c   : > { %960 = vrcp.f32 %v643_v23 }
 0x37d   : > { %962 = vrcp.f32 %v644_v24 }
 0x384   : > { %v957_v25 = vpop.eup %956 }
 0x385   : > { %660 = vperm.xlu1 %947, %v957_v25   ;;  %v959_v26 = vpop.eup %958 }
 0x386   : > { %655 = vperm.xlu0 %946, %v959_v26   ;;  %v961_v27 = vpop.eup %960 }
 0x387   : > { %v963_v28 = vpop.eup %962 }
 0x389   : > { %665 = vperm.xlu1 %947, %v961_v27  }
 0x38d   : > { %670 = vperm.xlu1 %947, %v963_v28  }
 0x404   : > { %v661_v29 = vpop.permute.xlu1 %660 }
 0x405   : > { %v675_v30 = vmul.f32 %v661_v29, %v1232_v8  ;;  %v676_v31 = vmul.f32 %v661_v29, %v1234_v9  ;;  %v656_v32 = vpop.permute.xlu0 %655 }
 0x406   : > { %v673_v33 = vmul.f32 %v656_v32, %v1220_v2  ;;  %v674_v34 = vmul.f32 %v656_v32, %v1224_v4 }
 0x407   : > { %683 = vst [vmem:[%s242_s7 + $0x10] sm:$0xff] %v675_v30  ;;  %684 = vst [vmem:[%s242_s7 + $0x18] sm:$0xff] %v676_v31 }
 0x408   : > { %v666_v35 = vpop.permute.xlu1 %665  ;;  %681 = vst [vmem:[%s242_s7] sm:$0xff] %v673_v33  ;;  %682 = vst [vmem:[%s242_s7 + $0x8] sm:$0xff] %v674_v34 }
 0x409   : > { %v677_v36 = vmul.f32 %v666_v35, %v1216_v0  ;;  %v678_v8 = vmul.f32 %v666_v35, %v1218_v1 }
 0x40b   : > { %685 = vst [vmem:[%s242_s7 + $0x20] sm:$0xff] %v677_v36  ;;  %686 = vst [vmem:[%s242_s7 + $0x28] sm:$0xff] %v678_v8 }
 0x40c   : > { %v671_v2 = vpop.permute.xlu1 %670 }
 0x40d   : > { %v679_v4 = vmul.f32 %v671_v2, %v1226_v5  ;;  %v680_v0 = vmul.f32 %v671_v2, %v1228_v6 }
 0x40f   : > { %687 = vst [vmem:[%s242_s7 + $0x30] sm:$0xff] %v679_v4  ;;  %688 = vst [vmem:[%s242_s7 + $0x38] sm:$0xff] %v680_v0 }
 0x410   : > { %1007 = shalt.err (!%p1004_p2)
}
 0x411   : > { %s1008_s12 = scalar_lea.hbm %s1310_s13, 1024  ;;  %s1012_s16 = scalar_lea.hbm %s1361_s5, 2048 }
 0x412   : > { %p1009_p4 = scmp.ne.s32.totalorder %s1310_s13, %s1008_s12  ;;  %p1013_p9 = scmp.lt.u32.totalorder %s1310_s13, %s1361_s5 }
 0x413   : > { %p1014_p1 = scmp.lt.u32.totalorder %s1012_s16, %s1008_s12  ;;  %p1016_p6 = scmp.lt.u32.totalorder %s1008_s12, %s1310_s13 }
 0x414   : > { %p1010_p5 = pnand %p1009_p4, %p1368_p11 }
 0x415   : > { %p1015_p3 = por %p1014_p1, %p1013_p9 }
 0x416   : > { %p1011_p7 = pneg %p1010_p5 }
 0x417   : > { %p1017_p12 = por %p1016_p6, %p1015_p3 }
 0x419   : > { %p1018_p13 = pnand %p1017_p12, %p1011_p7 }
 0x41b   : > { %1021 = shalt.err (!%p1018_p13)
}
 0x41c   : > { %s1070_s10 = smov 256   ;;  %s1071_s25 = smov 16  }
 0x41d   : > { %894 = dma.vmem_to_hbm [thread:$0]  (%p1368_p11), %s1305_s9, 1024, %s1310_s13, %s690_s22, %s1070_s10, %s1070_s10, %s1071_s25  }
 0x41e PF: > { %s718_s11 = sand.u32 1, %s1048_s18   ;;  %p1369_p8 = scmp.ne.s32.totalorder %s1366_s6, 0 }
 0x41f   : > { %p1370_p10 = scmp.ge.s32.totalorder %s1060_s21, 2  ;;  %s719_s17 = scalar_lea.sflag [#allocation4], %s718_s11 }
 0x421   : > { %p901_p0 = pnand %p1370_p10, %p1369_p8 }
 0x423   : > { %1043 = dma.done.wait (!%p901_p0), %s719_s17, 1024  }
 0x424   : > { %1045 = vsyncadd (!%p901_p0), %s719_s17, 4294966272  ;;  %p18_p2 = scmp.ge.s32.totalorder %s1127_s24, 4   ;;  %s1371_s18 = smov %s1052_s19 }
 0x425   : > { %s1372_s19 = smov %s1056_s20  ;;  %s1373_s20 = smov %s1139_s27 }
 0x426   : > { %s1374_s21 = smov %s1127_s24  ;;  %20 = sbr.rel (!%p18_p2) target bundleno = 5 (0x5), region = 85 }
 0x42d   :  { %724 = vsyncpa [#allocation3], 1 }
 0x42e   :  { %726 = vsyncpa [#allocation3 + $0x1], 1 }
 0x42f   :  { %727 = vsyncpa [#allocation4], 1 }
 0x430   :  { %729 = vsyncpa [#allocation4 + $0x1], 1 }

</bundles_post_ra>
